<compile_context>
chip_gen: v6e
topology: v6e:2x2x1
jax: 0.10.0
libtpu: 0.0.40
codegen_flags: <defaults>
</compile_context>

<pallas_src>
import functools
import math

import jax
import jax.numpy as jnp
from jax import lax
from jax.experimental import pallas as pl
from jax.experimental.pallas import tpu as pltpu


# ----------------------------- VMEM budgeting ------------------------------

def _vmem_capacity_bytes():
    try:
        info = pltpu.get_tpu_info()
        cap = getattr(info, "vmem_capacity_bytes", None)
        if cap:
            return int(cap)
    except Exception:
        pass
    return 64 * 1024 * 1024  # conservative (v7x per-TC)


def _vmem_budget_bytes():
    cap = _vmem_capacity_bytes()
    # Leave >= 8 MiB (or 1/8 of capacity) headroom for compiler scratch.
    return cap - max(8 * 1024 * 1024, cap // 8)


def _vmem_limit(nbytes):
    return int(min(max(nbytes, 16 * 1024 * 1024), _vmem_budget_bytes()))


def _round_up(x, m):
    return ((x + m - 1) // m) * m


# ----------------------------- Pallas kernels ------------------------------

def qkv_kernel(x_ref, w_ref, b_ref, q_ref, k_ref, v_ref, *, hidden):
    # x: (tile_rows, H) bf16; w: (H, 3H) bf16 (pre-transposed, scale folded
    # into the Q columns); b: (1, 3H) f32.  One MXU stream, then three
    # column-slice stores (128-aligned when H % 128 == 0).
    x = x_ref[...]
    y = jnp.dot(x, w_ref[...], preferred_element_type=jnp.float32) + b_ref[...]
    q_ref[...] = y[:, :hidden].astype(q_ref.dtype)
    k_ref[...] = y[:, hidden:2 * hidden].astype(k_ref.dtype)
    v_ref[...] = y[:, 2 * hidden:].astype(v_ref.dtype)


def attn_kernel(q_ref, k_ref, v_ref, mask_ref, o_ref, *,
                head_dim, heads_per_step):
    # q/k/v refs: (1, S, group_w) bf16 column-group of heads (group_w =
    # heads_per_step * head_dim).  mask: (1, S) additive key mask (constant
    # over heads / query positions).  o_ref: (1, S, group_w) bf16, already in
    # final (B, S, H) layout -> no output permute.
    mask = mask_ref[...]                               # (1, S) f32
    ctxs = []
    for h in range(heads_per_step):                    # small static unroll
        lo = h * head_dim
        q = q_ref[0, :, lo:lo + head_dim]              # (S, D) bf16 (pre-scaled)
        k = k_ref[0, :, lo:lo + head_dim]              # (S, D) bf16
        v = v_ref[0, :, lo:lo + head_dim]              # (S, D) bf16

        # QK^T without materializing a transpose: contract last axes.
        scores = lax.dot_general(q, k, (((1,), (1,)), ((), ())),
                                 preferred_element_type=jnp.float32)  # (S, S)
        scores = scores + mask                         # broadcast over queries

        m = jnp.max(scores, axis=-1, keepdims=True)
        p = jnp.exp(scores - m)                        # (S, S) f32
        l = jnp.sum(p, axis=-1, keepdims=True)         # (S, 1) f32

        # Normalize AFTER the PV matmul: S*D scale instead of S*S.
        ctx = jnp.dot(p.astype(v.dtype), v, preferred_element_type=jnp.float32)
        ctxs.append(ctx * pl.reciprocal(l, approx=True))

    out = ctxs[0] if heads_per_step == 1 else jnp.concatenate(ctxs, axis=-1)
    # Single lane-dense (S, group_w) store per grid step.
    o_ref[0] = out.astype(o_ref.dtype)


# ------------------------------ tiling helpers ------------------------------

def _qkv_footprint(tile_rows, hidden, itemsize, w_buffers=2):
    io = 2 * (tile_rows * hidden * itemsize            # x (double buffered)
              + 3 * tile_rows * hidden * itemsize)     # q/k/v outputs
    w = w_buffers * (hidden * 3 * hidden * itemsize + 3 * hidden * 4)
    work = tile_rows * 3 * hidden * 4                  # f32 matmul result
    return io + w + work


def _attn_footprint(seq_len, group_w, itemsize, out_itemsize):
    blocks = 2 * (3 * seq_len * group_w * itemsize     # q/k/v blocks
                  + seq_len * group_w * out_itemsize   # output block
                  + seq_len * 4)                       # mask
    work = 4 * seq_len * seq_len * 4 + 4 * seq_len * group_w * 4
    return blocks + work


def _choose_heads_per_step(num_heads, head_dim, seq_len, itemsize,
                           out_itemsize, budget):
    # Valid head groups: divisor of num_heads AND lane width either a multiple
    # of 128 or the full hidden dim (BlockSpec (8,128)/full-dim rule).
    def valid(hps):
        gw = hps * head_dim
        return num_heads % hps == 0 and (gw % 128 == 0 or hps == num_heads)

    def fits(hps):
        return _attn_footprint(seq_len, hps * head_dim, itemsize,
                               out_itemsize) <= budget

    candidates = [h for h in range(num_heads, 0, -1) if valid(h)]
    # Prefer the widest lane-dense group up to 512 lanes that fits VMEM.
    for hps in candidates:
        if hps * head_dim <= 512 and fits(hps):
            return hps
    for hps in candidates:
        if fits(hps):
            return hps
    return candidates[-1]  # best effort (smallest valid)


# ------------------------------ Python wrapper ------------------------------

def bert_self_attention(hidden_states, attention_mask, params,
                        num_heads, head_dim, compute_dtype=jnp.bfloat16):
    """hidden_states: (B, S, H) f32; attention_mask: (B, 1, 1, S) f32 additive."""
    B, S, H = hidden_states.shape
    all_head = num_heads * head_dim
    assert all_head == H

    scale = 1.0 / math.sqrt(head_dim)
    itemsize = jnp.dtype(compute_dtype).itemsize
    budget = _vmem_budget_bytes()

    # One-time HBM-side prep: transpose weights to (H_in, H_out), concatenate
    # to a single (H, 3H) slab, fold the softmax scale into the Q columns,
    # cast MXU operands to bf16.
    wqkv = jnp.concatenate(
        [params["wq"].T * scale, params["wk"].T, params["wv"].T],
        axis=1).astype(compute_dtype)                         # (H, 3H)
    bqkv = jnp.concatenate(
        [params["bq"] * scale, params["bk"], params["bv"]],
        axis=0).reshape(1, 3 * H).astype(jnp.float32)         # (1, 3H)

    x2d = hidden_states.reshape(B * S, H).astype(compute_dtype)
    n_tok = B * S

    # Row tile for the QKV matmul: up to 1024 rows (multiple of 8), shrunk
    # only if the VMEM budget demands it; tokens padded to a tile multiple.
    tile_rows = min(1024, _round_up(n_tok, 8))
    while tile_rows > 8 and _qkv_footprint(tile_rows, H, itemsize) > budget:
        tile_rows = max(8, (tile_rows // 2 // 8) * 8)
    n_pad = _round_up(n_tok, tile_rows)
    if n_pad != n_tok:
        x2d = jnp.pad(x2d, ((0, n_pad - n_tok), (0, 0)))

    qkv_vmem = _vmem_limit(_qkv_footprint(tile_rows, H, itemsize))

    # --- Kernel 1: tiled, pipelined fused QKV projection -------------------
    def _qkv_call(weight_kwargs):
        return pl.pallas_call(
            functools.partial(qkv_kernel, hidden=H),
            out_shape=(jax.ShapeDtypeStruct((n_pad, H), compute_dtype),) * 3,
            grid=(n_pad // tile_rows,),
            in_specs=[
                pl.BlockSpec((tile_rows, H), lambda i: (i, 0)),          # x
                pl.BlockSpec((H, 3 * H), lambda i: (0, 0), **weight_kwargs),
                pl.BlockSpec((1, 3 * H), lambda i: (0, 0), **weight_kwargs),
            ],
            out_specs=(pl.BlockSpec((tile_rows, H), lambda i: (i, 0)),) * 3,
            compiler_params=pltpu.CompilerParams(
                dimension_semantics=("parallel",),
                vmem_limit_bytes=qkv_vmem),
        )(x2d, wqkv, bqkv)

    try:
        # Resident weights: single-buffered (constant index_map -> no refetch).
        q2d, k2d, v2d = _qkv_call({"pipeline_mode": pl.Buffered(1)})
    except Exception:
        # TODO(synk): pipeline_mode=Buffered(1) unsupported on this JAX build.
        q2d, k2d, v2d = _qkv_call({})

    if n_pad != n_tok:
        q2d, k2d, v2d = q2d[:n_tok], k2d[:n_tok], v2d[:n_tok]

    # Free reshapes only (row-major): (B*S, H) -> (B, S, H). No head permutes.
    q3 = q2d.reshape(B, S, H)
    k3 = k2d.reshape(B, S, H)
    v3 = v2d.reshape(B, S, H)
    # Standard BERT extended mask: constant over heads and query positions.
    mask2d = attention_mask.reshape(B, S).astype(jnp.float32)

    # Pack heads per attention step (wide lane-dense blocks, up to 512 lanes).
    out_itemsize = jnp.dtype(compute_dtype).itemsize
    heads_per_step = _choose_heads_per_step(
        num_heads, head_dim, S, itemsize, out_itemsize, budget)
    group_w = heads_per_step * head_dim
    num_groups = num_heads // heads_per_step

    attn_vmem = _vmem_limit(_attn_footprint(S, group_w, itemsize, out_itemsize))

    # --- Kernel 2: attention per (batch, head-group), (B,S,H) in/out -------
    out = pl.pallas_call(
        functools.partial(attn_kernel, head_dim=head_dim,
                          heads_per_step=heads_per_step),
        out_shape=jax.ShapeDtypeStruct((B, S, H), compute_dtype),
        grid=(B, num_groups),
        in_specs=[
            pl.BlockSpec((1, S, group_w), lambda b, g: (b, 0, g)),
            pl.BlockSpec((1, S, group_w), lambda b, g: (b, 0, g)),
            pl.BlockSpec((1, S, group_w), lambda b, g: (b, 0, g)),
            pl.BlockSpec((1, S), lambda b, g: (b, 0)),
        ],
        out_specs=pl.BlockSpec((1, S, group_w), lambda b, g: (b, 0, g)),
        compiler_params=pltpu.CompilerParams(
            dimension_semantics=("parallel", "parallel"),
            vmem_limit_bytes=attn_vmem),
    )(q3, k3, v3, mask2d)

    # Output already has the (B, S, all_head) layout of the PyTorch module.
    return out


# ------------------------------- reference ----------------------------------

def bert_self_attention_ref(hidden_states, attention_mask, params,
                            num_heads, head_dim):
    B, S, H = hidden_states.shape
    q = hidden_states @ params["wq"].T + params["bq"]
    k = hidden_states @ params["wk"].T + params["bk"]
    v = hidden_states @ params["wv"].T + params["bv"]

    def split(t):
        return t.reshape(B, S, num_heads, head_dim).transpose(0, 2, 1, 3)

    q, k, v = split(q), split(k), split(v)
    scores = jnp.einsum("bhqd,bhkd->bhqk", q, k) / math.sqrt(head_dim)
    scores = scores + attention_mask
    probs = jax.nn.softmax(scores, axis=-1)
    ctx = jnp.einsum("bhqk,bhkd->bhqd", probs, v)
    return ctx.transpose(0, 2, 1, 3).reshape(B, S, num_heads * head_dim)


# --------------------------------- main --------------------------------------

if __name__ == "__main__":
    # Small config consistent with the module (hidden divisible by num_heads).
    B, S = 2, 8
    num_heads, head_dim = 4, 8
    hidden = num_heads * head_dim          # 32
    initializer_range = 0.02

    key = jax.random.PRNGKey(0)
    k_x, k_wq, k_wk, k_wv = jax.random.split(key, 4)

    hidden_states = jax.random.normal(k_x, (B, S, hidden), dtype=jnp.float32)

    params = {
        "wq": initializer_range * jax.random.normal(
            k_wq, (hidden, hidden), dtype=jnp.float32),
        "wk": initializer_range * jax.random.normal(
            k_wk, (hidden, hidden), dtype=jnp.float32),
        "wv": initializer_range * jax.random.normal(
            k_wv, (hidden, hidden), dtype=jnp.float32),
        "bq": jnp.zeros((hidden,), jnp.float32),
        "bk": jnp.zeros((hidden,), jnp.float32),
        "bv": jnp.zeros((hidden,), jnp.float32),
    }

    # Standard BERT extended attention mask: last key positions padded.
    pad = jnp.array([[1, 1, 1, 1, 1, 1, 0, 0],
                     [1, 1, 1, 1, 1, 0, 0, 0]], dtype=jnp.float32)
    attention_mask = (1.0 - pad)[:, None, None, :] * -10000.0   # (B,1,1,S)

    out = bert_self_attention(hidden_states, attention_mask, params,
                              num_heads, head_dim)
    out = jax.block_until_ready(out)

    ref = bert_self_attention_ref(hidden_states, attention_mask, params,
                                  num_heads, head_dim)
    assert out.shape == (B, S, hidden)
    # bf16 MXU operands, bf16 output, approx reciprocal -> loosened tolerance.
    out_f32 = out.astype(jnp.float32)
    assert jnp.allclose(out_f32, ref, atol=1e-2, rtol=1e-2), \
        f"max abs diff {jnp.max(jnp.abs(out_f32 - ref))}"

    print("KERNEL_OK")
</pallas_src>

<mosaic_0001>
module attributes {stable_mosaic.version = 11 : i64} {
  func.func @qkv_kernel(%arg0: i32, %arg1: memref<16x32xbf16, #tpu.memory_space<vmem>>, %arg2: memref<32x96xbf16, #tpu.memory_space<vmem>>, %arg3: memref<1x96xf32, #tpu.memory_space<vmem>>, %arg4: memref<16x32xbf16, #tpu.memory_space<vmem>>, %arg5: memref<16x32xbf16, #tpu.memory_space<vmem>>, %arg6: memref<16x32xbf16, #tpu.memory_space<vmem>>) attributes {dimension_semantics = [#tpu.dimension_semantics<parallel>], iteration_bounds = array<i64: 1>, scalar_prefetch = 0 : i64, scratch_operands = 0 : i64, tpu.core_type = #tpu.core_type<tc>, window_params = [{transform_indices = @transform_0, window_bounds = array<i64: 16, 32>}, {pipeline_mode = #tpu.pipeline_mode<synchronous>, transform_indices = @transform_1, window_bounds = array<i64: 32, 96>}, {pipeline_mode = #tpu.pipeline_mode<synchronous>, transform_indices = @transform_2, window_bounds = array<i64: 1, 96>}, {transform_indices = @transform_3, window_bounds = array<i64: 16, 32>}, {transform_indices = @transform_4, window_bounds = array<i64: 16, 32>}, {transform_indices = @transform_5, window_bounds = array<i64: 16, 32>}]} {
    %c0 = arith.constant 0 : index
    %c0_0 = arith.constant 0 : index
    %0 = vector.load %arg1[%c0, %c0_0] : memref<16x32xbf16, #tpu.memory_space<vmem>>, vector<16x32xbf16>
    %c0_1 = arith.constant 0 : index
    %c0_2 = arith.constant 0 : index
    %1 = vector.load %arg2[%c0_1, %c0_2] : memref<32x96xbf16, #tpu.memory_space<vmem>>, vector<32x96xbf16>
    %cst = arith.constant dense<0.000000e+00> : vector<16x96xf32>
    %2 = tpu.matmul %0, %1, %cst {dimension_numbers = #tpu.dot_dimension_numbers<[1], [0], [0], [1], [0, 0, 1, 1], [], []>} : vector<16x32xbf16>, vector<32x96xbf16>, vector<16x96xf32> -> vector<16x96xf32>
    %c0_3 = arith.constant 0 : index
    %c0_4 = arith.constant 0 : index
    %3 = vector.load %arg3[%c0_3, %c0_4] : memref<1x96xf32, #tpu.memory_space<vmem>>, vector<1x96xf32>
    %4 = vector.broadcast %3 : vector<1x96xf32> to vector<16x96xf32>
    %5 = arith.addf %2, %4 : vector<16x96xf32>
    %6 = vector.extract_strided_slice %5 {offsets = [0, 0], sizes = [16, 32], strides = [1, 1]} : vector<16x96xf32> to vector<16x32xf32>
    %7 = arith.truncf %6 : vector<16x32xf32> to vector<16x32xbf16>
    %c0_5 = arith.constant 0 : index
    %c0_6 = arith.constant 0 : index
    %8 = vector.load %arg4[%c0_5, %c0_6] : memref<16x32xbf16, #tpu.memory_space<vmem>>, vector<16x32xbf16>
    tpu.vector_store %arg4[%c0_5, %c0_6], %7 {strides = array<i32>} : memref<16x32xbf16, #tpu.memory_space<vmem>>, vector<16x32xbf16>,
    %9 = vector.extract_strided_slice %5 {offsets = [0, 32], sizes = [16, 32], strides = [1, 1]} : vector<16x96xf32> to vector<16x32xf32>
    %10 = arith.truncf %9 : vector<16x32xf32> to vector<16x32xbf16>
    %c0_7 = arith.constant 0 : index
    %c0_8 = arith.constant 0 : index
    %11 = vector.load %arg5[%c0_7, %c0_8] : memref<16x32xbf16, #tpu.memory_space<vmem>>, vector<16x32xbf16>
    tpu.vector_store %arg5[%c0_7, %c0_8], %10 {strides = array<i32>} : memref<16x32xbf16, #tpu.memory_space<vmem>>, vector<16x32xbf16>,
    %12 = vector.extract_strided_slice %5 {offsets = [0, 64], sizes = [16, 32], strides = [1, 1]} : vector<16x96xf32> to vector<16x32xf32>
    %13 = arith.truncf %12 : vector<16x32xf32> to vector<16x32xbf16>
    %c0_9 = arith.constant 0 : index
    %c0_10 = arith.constant 0 : index
    %14 = vector.load %arg6[%c0_9, %c0_10] : memref<16x32xbf16, #tpu.memory_space<vmem>>, vector<16x32xbf16>
    tpu.vector_store %arg6[%c0_9, %c0_10], %13 {strides = array<i32>} : memref<16x32xbf16, #tpu.memory_space<vmem>>, vector<16x32xbf16>,
    return
  }
  func.func @transform_0(%arg0: i32) -> (i32, i32) {
    %c0_i32 = arith.constant 0 : i32
    %c0_i32_0 = arith.constant 0 : i32
    return %arg0, %c0_i32 : i32, i32
  }
  func.func @transform_1(%arg0: i32) -> (i32, i32) {
    %c0_i32 = arith.constant 0 : i32
    %c0_i32_0 = arith.constant 0 : i32
    %c0_i32_1 = arith.constant 0 : i32
    return %c0_i32, %c0_i32_0 : i32, i32
  }
  func.func @transform_2(%arg0: i32) -> (i32, i32) {
    %c0_i32 = arith.constant 0 : i32
    %c0_i32_0 = arith.constant 0 : i32
    %c0_i32_1 = arith.constant 0 : i32
    return %c0_i32, %c0_i32_0 : i32, i32
  }
  func.func @transform_3(%arg0: i32) -> (i32, i32) {
    %c0_i32 = arith.constant 0 : i32
    %c0_i32_0 = arith.constant 0 : i32
    return %arg0, %c0_i32 : i32, i32
  }
  func.func @transform_4(%arg0: i32) -> (i32, i32) {
    %c0_i32 = arith.constant 0 : i32
    %c0_i32_0 = arith.constant 0 : i32
    return %arg0, %c0_i32 : i32, i32
  }
  func.func @transform_5(%arg0: i32) -> (i32, i32) {
    %c0_i32 = arith.constant 0 : i32
    %c0_i32_0 = arith.constant 0 : i32
    return %arg0, %c0_i32 : i32, i32
  }
}

module attributes {stable_mosaic.version = 11 : i64} {
  func.func @qkv_kernel(%arg0: i32, %arg1: memref<16x32xbf16, #tpu.memory_space<vmem>>, %arg2: memref<32x96xbf16, #tpu.memory_space<vmem>>, %arg3: memref<1x96xf32, #tpu.memory_space<vmem>>, %arg4: memref<16x32xbf16, #tpu.memory_space<vmem>>, %arg5: memref<16x32xbf16, #tpu.memory_space<vmem>>, %arg6: memref<16x32xbf16, #tpu.memory_space<vmem>>) attributes {dimension_semantics = [#tpu.dimension_semantics<parallel>], iteration_bounds = array<i64: 1>, scalar_prefetch = 0 : i64, scratch_operands = 0 : i64, tpu.core_type = #tpu.core_type<tc>, window_params = [{transform_indices = @transform_0, window_bounds = array<i64: 16, 32>}, {pipeline_mode = #tpu.pipeline_mode<synchronous>, transform_indices = @transform_1, window_bounds = array<i64: 32, 96>}, {pipeline_mode = #tpu.pipeline_mode<synchronous>, transform_indices = @transform_2, window_bounds = array<i64: 1, 96>}, {transform_indices = @transform_3, window_bounds = array<i64: 16, 32>}, {transform_indices = @transform_4, window_bounds = array<i64: 16, 32>}, {transform_indices = @transform_5, window_bounds = array<i64: 16, 32>}]} {
    %c0 = arith.constant 0 : index
    %c0_0 = arith.constant 0 : index
    %0 = vector.load %arg1[%c0, %c0_0] : memref<16x32xbf16, #tpu.memory_space<vmem>>, vector<16x32xbf16>
    %c0_1 = arith.constant 0 : index
    %c0_2 = arith.constant 0 : index
    %1 = vector.load %arg2[%c0_1, %c0_2] : memref<32x96xbf16, #tpu.memory_space<vmem>>, vector<32x96xbf16>
    %cst = arith.constant dense<0.000000e+00> : vector<16x96xf32>
    %2 = tpu.matmul %0, %1, %cst {dimension_numbers = #tpu.dot_dimension_numbers<[1], [0], [0], [1], [0, 0, 1, 1], [], []>} : vector<16x32xbf16>, vector<32x96xbf16>, vector<16x96xf32> -> vector<16x96xf32>
    %c0_3 = arith.constant 0 : index
    %c0_4 = arith.constant 0 : index
    %3 = vector.load %arg3[%c0_3, %c0_4] : memref<1x96xf32, #tpu.memory_space<vmem>>, vector<1x96xf32>
    %4 = vector.broadcast %3 : vector<1x96xf32> to vector<16x96xf32>
    %5 = arith.addf %2, %4 : vector<16x96xf32>
    %6 = vector.extract_strided_slice %5 {offsets = [0, 0], sizes = [16, 32], strides = [1, 1]} : vector<16x96xf32> to vector<16x32xf32>
    %7 = arith.truncf %6 : vector<16x32xf32> to vector<16x32xbf16>
    %c0_5 = arith.constant 0 : index
    %c0_6 = arith.constant 0 : index
    %8 = vector.load %arg4[%c0_5, %c0_6] : memref<16x32xbf16, #tpu.memory_space<vmem>>, vector<16x32xbf16>
    tpu.vector_store %arg4[%c0_5, %c0_6], %7 {strides = array<i32>} : memref<16x32xbf16, #tpu.memory_space<vmem>>, vector<16x32xbf16>,
    %9 = vector.extract_strided_slice %5 {offsets = [0, 32], sizes = [16, 32], strides = [1, 1]} : vector<16x96xf32> to vector<16x32xf32>
    %10 = arith.truncf %9 : vector<16x32xf32> to vector<16x32xbf16>
    %c0_7 = arith.constant 0 : index
    %c0_8 = arith.constant 0 : index
    %11 = vector.load %arg5[%c0_7, %c0_8] : memref<16x32xbf16, #tpu.memory_space<vmem>>, vector<16x32xbf16>
    tpu.vector_store %arg5[%c0_7, %c0_8], %10 {strides = array<i32>} : memref<16x32xbf16, #tpu.memory_space<vmem>>, vector<16x32xbf16>,
    %12 = vector.extract_strided_slice %5 {offsets = [0, 64], sizes = [16, 32], strides = [1, 1]} : vector<16x96xf32> to vector<16x32xf32>
    %13 = arith.truncf %12 : vector<16x32xf32> to vector<16x32xbf16>
    %c0_9 = arith.constant 0 : index
    %c0_10 = arith.constant 0 : index
    %14 = vector.load %arg6[%c0_9, %c0_10] : memref<16x32xbf16, #tpu.memory_space<vmem>>, vector<16x32xbf16>
    tpu.vector_store %arg6[%c0_9, %c0_10], %13 {strides = array<i32>} : memref<16x32xbf16, #tpu.memory_space<vmem>>, vector<16x32xbf16>,
    return
  }
  func.func @transform_0(%arg0: i32) -> (i32, i32) {
    %c0_i32 = arith.constant 0 : i32
    %c0_i32_0 = arith.constant 0 : i32
    return %arg0, %c0_i32 : i32, i32
  }
  func.func @transform_1(%arg0: i32) -> (i32, i32) {
    %c0_i32 = arith.constant 0 : i32
    %c0_i32_0 = arith.constant 0 : i32
    %c0_i32_1 = arith.constant 0 : i32
    return %c0_i32, %c0_i32_0 : i32, i32
  }
  func.func @transform_2(%arg0: i32) -> (i32, i32) {
    %c0_i32 = arith.constant 0 : i32
    %c0_i32_0 = arith.constant 0 : i32
    %c0_i32_1 = arith.constant 0 : i32
    return %c0_i32, %c0_i32_0 : i32, i32
  }
  func.func @transform_3(%arg0: i32) -> (i32, i32) {
    %c0_i32 = arith.constant 0 : i32
    %c0_i32_0 = arith.constant 0 : i32
    return %arg0, %c0_i32 : i32, i32
  }
  func.func @transform_4(%arg0: i32) -> (i32, i32) {
    %c0_i32 = arith.constant 0 : i32
    %c0_i32_0 = arith.constant 0 : i32
    return %arg0, %c0_i32 : i32, i32
  }
  func.func @transform_5(%arg0: i32) -> (i32, i32) {
    %c0_i32 = arith.constant 0 : i32
    %c0_i32_0 = arith.constant 0 : i32
    return %arg0, %c0_i32 : i32, i32
  }
}

</mosaic_0001>

<bundles_post_ra>
// kernel: tpu_custom_call.1
= control target key start
LH: loop header
LB: loop body
LE: loop exit
PB: predicated region body
PF: predicated region fallthrough
CT: control target
= control target key end

     0   :  { %11 = vsyncpa [#allocation3], 0  ;;  %s421_s0 = inlined_call_operand.hbm [shape: bf16[16,32], index: 0, kind: input, shape index: {}]   ;;  %s422_s1 = inlined_call_operand.hbm [shape: bf16[32,96], index: 1, kind: input, shape index: {}]   ;;  %s423_s2 = inlined_call_operand.vmem [shape: f32[1,96], index: 2, kind: input, shape index: {}]   ;;  %s424_s3 = inlined_call_operand.hbm [shape: bf16[16,32], index: 3, kind: output, shape index: {0}]   ;;  %s425_s4 = inlined_call_operand.hbm [shape: bf16[16,32], index: 4, kind: output, shape index: {1}]   ;;  %s426_s5 = inlined_call_operand.hbm [shape: bf16[16,32], index: 5, kind: output, shape index: {2}]  }
   0x1   :  { %12 = vsyncpa [#allocation6], 0 }
   0x2   :  { %13 = vsyncpa [#allocation4], 0 }
   0x3   :  { %14 = vsyncpa [#allocation9], 0  ;;  %s340_s18 = smov [#allocation2]  }
   0x4   :  { %s20_s19 = sshll.u32 %s340_s18, 4  ;;  %s21_s19 = int_to_ptr.vmem [resolvable:$true] %s20_s19 }
   0x5   :  { %s240_s20 = scalar_lea.vmem %s21_s19, 128  ;;  %p245_p1 = scmp.lt.s32.totalorder %s21_s19, %s21_s19 }
   0x6   :  { %p241_p0 = scmp.ne.s32.totalorder %s21_s19, %s240_s20  ;;  %p246_p2 = scmp.lt.s32.totalorder %s240_s20, %s240_s20 }
   0x8   :  { %p247_p3 = por %p246_p2, %p245_p1 }
   0xa   :  { %p248_p4 = pnand %p247_p3, %p241_p0 }
   0xc   :  { %251 = shalt.err (!%p248_p4)
}
   0xd   :  { %s341_s21 = smov 64   ;;  %s342_s22 = smov 4  }
   0xe   :  { %26 = dma.hbm_to_vmem [thread:$0]  %s421_s0, 128, %s21_s19, [#allocation3], %s341_s21, %s341_s21, %s342_s22  }
   0xf   :  { %s343_s25 = smov [#allocation5]  }
  0x10   :  { %s32_s26 = sshll.u32 %s343_s25, 4  ;;  %s33_s26 = int_to_ptr.vmem [resolvable:$true] %s32_s26 }
  0x11   :  { %s260_s27 = scalar_lea.vmem %s33_s26, 256  ;;  %p265_p6 = scmp.lt.s32.totalorder %s33_s26, %s33_s26 }
  0x12   :  { %p261_p5 = scmp.ne.s32.totalorder %s33_s26, %s260_s27  ;;  %p266_p7 = scmp.lt.s32.totalorder %s260_s27, %s260_s27 }
  0x14   :  { %p267_p8 = por %p266_p7, %p265_p6 }
  0x16   :  { %p268_p9 = pnand %p267_p8, %p261_p5 }
  0x18   :  { %271 = shalt.err (!%p268_p9)
}
  0x19   :  { %38 = dma.hbm_to_vmem [thread:$0]  %s422_s1, 256, %s33_s26, [#allocation6], %s341_s21, %s341_s21, %s342_s22  }
  0x1a   :  { %332 = dma.done.wait [#allocation3], 128  }
  0x1b   :  { %333 = vsyncadd [#allocation3], 4294967168 }
  0x1c   :  { %334 = dma.done.wait [#allocation6], 256  }
  0x1d   :  { %335 = vsyncadd [#allocation6], 4294967040  ;;  %v344_v0 = vmov 0.0   ;;  %vm345_vm0 = vmmov 0   ;;  %v229_v1 = vld [vmem:[#allocation5 + $0x8] sm:$0xff]   ;;  %v230_v2 = vld [vmem:[#allocation5] sm:$0xff]  }
  0x1e   :  { %211 = vmatprep.subr.bf16.mxu0 %v344_v0  ;;  %215 = vmatprep.mubr.msk.bf16.mxu0 %vm345_vm0, %v344_v0  ;;  %v231_v3 = vld [vmem:[#allocation2] sm:$0xff]   ;;  %vm78_vm1 = vcmask 261120   ;;  %vm131_vm2 = vcmask 257024   ;;  %s346_s1 = smov [#allocation7]   ;;  %s347_s7 = smov 96  }
  0x1f   :  { %212 = vmatpush3.bf16.msra.mxu0 %v229_v1  ;;  %v199_v4 = vld [vmem:[%s423_s2] ss:$0 sm:$0xff]  ;;  %s155_s6 = sshll.u32 %s346_s1, 4  ;;  %s156_s6 = int_to_ptr.vmem [resolvable:$true] %s155_s6 }
  0x20   :  { %213 = vmatprep.subr.bf16.mxu0 %v344_v0  ;;  %s272_s2 = scalar_lea.vmem %s156_s6, 128  ;;  %p277_p11 = scmp.lt.s32.totalorder %s156_s6, %s156_s6 }
  0x21   :  { %p273_p10 = scmp.ne.s32.totalorder %s156_s6, %s272_s2  ;;  %p278_p12 = scmp.lt.s32.totalorder %s272_s2, %s272_s2 }
  0x23   :  { %214 = vmatpush3.bf16.msra.mxu0 %v230_v2  ;;  %p279_p13 = por %p278_p12, %p277_p11 }
  0x25   :  { %p280_p0 = pnand %p279_p13, %p273_p10 }
  0x26   :  { %216 = vmatmul.mubr.msk.bf16.vlgmr.msra.gmra.mxu0 %vm78_vm1, %v231_v3 }
  0xe6   :  { %v116_v5 = vpop.f32.mrf.mxu0 }
  0xe7   :  { %v117_v6 = vadd.f32 %v199_v4, %v116_v5 }
  0xe8   :  { %v217_v7 = vpop.f32.mrf.mxu0 }
  0xe9   :  { %v206_v8 = vpack.c.bf16 %v117_v6, %v117_v6 }
  0xea   :  { %v119_v9 = vpop.f32.mrf.mxu0 }
  0xeb   :  { %v120_v10 = vadd.f32 %v199_v4, %v119_v9  ;;  %142 = vrot.lane.b32.xlu1 %v206_v8, %s341_s21  ;;  %134 = vrot.lane.b32.xlu0 %v206_v8, %s347_s7  ;;  %132 = vst.msk [vmem:[#allocation7] sm:$0xf] %vm131_vm2, %v206_v8 }
  0xec   :  { %v218_v11 = vpop.f32.mrf.mxu0 }
  0xed   :  { %v207_v12 = vpack.c.bf16 %v120_v10, %v120_v10 }
  0xef   :  { %144 = vrot.lane.b32.xlu1 %v207_v12, %s341_s21  ;;  %136 = vrot.lane.b32.xlu0 %v207_v12, %s347_s7  ;;  %133 = vst.msk [vmem:[#allocation7 + $0x4] sm:$0xf] %vm131_vm2, %v207_v12 }
  0xf0   :  { %283 = shalt.err (!%p280_p0)
}
  0xf1   :  { %161 = dma.vmem_to_hbm [thread:$0]  %s156_s6, 128, %s424_s3, [#allocation4], %s341_s21, %s341_s21, %s342_s22  }
  0xf2   :  { %s348_s10 = smov [#allocation8]   ;;  %s349_s12 = smov [#allocation10]  }
  0xf3   :  { %s167_s11 = sshll.u32 %s348_s10, 4  ;;  %s179_s13 = sshll.u32 %s349_s12, 4  ;;  %s168_s11 = int_to_ptr.vmem [resolvable:$true] %s167_s11  ;;  %s180_s13 = int_to_ptr.vmem [resolvable:$true] %s179_s13 }
  0xf4   :  { %s292_s14 = scalar_lea.vmem %s168_s11, 128  ;;  %p297_p2 = scmp.lt.s32.totalorder %s168_s11, %s168_s11 }
  0xf5   :  { %p293_p1 = scmp.ne.s32.totalorder %s168_s11, %s292_s14  ;;  %p298_p3 = scmp.lt.s32.totalorder %s292_s14, %s292_s14 }
  0xf7   :  { %p299_p4 = por %p298_p3, %p297_p2 }
  0xf9   :  { %p300_p5 = pnand %p299_p4, %p293_p1 }
 0x15d   :  { %v143_v13 = vpop.permute.xlu1 %142  ;;  %v135_v14 = vpop.permute.xlu0 %134 }
 0x15e   :  { %148 = vst.msk [vmem:[#allocation10] sm:$0xf] %vm131_vm2, %v143_v13  ;;  %140 = vst.msk [vmem:[#allocation8] sm:$0xf] %vm131_vm2, %v135_v14 }
 0x161   :  { %v145_v15 = vpop.permute.xlu1 %144  ;;  %v137_v16 = vpop.permute.xlu0 %136 }
 0x162   :  { %149 = vst.msk [vmem:[#allocation10 + $0x4] sm:$0xf] %vm131_vm2, %v145_v15  ;;  %141 = vst.msk [vmem:[#allocation8 + $0x4] sm:$0xf] %vm131_vm2, %v137_v16 }
 0x163   :  { %303 = shalt.err (!%p300_p5)
}
 0x164   :  { %173 = dma.vmem_to_hbm [thread:$0]  %s168_s11, 128, %s425_s4, [#allocation9], %s341_s21, %s341_s21, %s342_s22  }
 0x165   :  { %s312_s16 = scalar_lea.vmem %s180_s13, 128  ;;  %p317_p7 = scmp.lt.s32.totalorder %s180_s13, %s180_s13 }
 0x166   :  { %p313_p6 = scmp.ne.s32.totalorder %s180_s13, %s312_s16  ;;  %p318_p8 = scmp.lt.s32.totalorder %s312_s16, %s312_s16 }
 0x168   :  { %p319_p9 = por %p318_p8, %p317_p7 }
 0x16a   :  { %p320_p10 = pnand %p319_p9, %p313_p6 }
 0x16c   :  { %323 = shalt.err (!%p320_p10)
}
 0x16d   :  { %185 = dma.vmem_to_hbm [thread:$0]  %s180_s13, 128, %s426_s5, [#allocation9], %s341_s21, %s341_s21, %s342_s22  }
 0x16e   :  { %336 = dma.done.wait [#allocation4], 128  }
 0x16f   :  { %337 = vsyncadd [#allocation4], 4294967168 }
 0x170   :  { %338 = dma.done.wait [#allocation9], 256  }
 0x171   :  { %339 = vsyncadd [#allocation9], 4294967040 }
 0x172   :  { %195 = vsyncpa [#allocation3], 1 }
 0x173   :  { %196 = vsyncpa [#allocation6], 1 }
 0x174   :  { %197 = vsyncpa [#allocation4], 1 }
 0x175   :  { %198 = vsyncpa [#allocation9], 1 }

// kernel: tpu_custom_call.1
= control target key start
LH: loop header
LB: loop body
LE: loop exit
PB: predicated region body
PF: predicated region fallthrough
CT: control target
= control target key end

     0   :  { %11 = vsyncpa [#allocation3], 0  ;;  %s421_s0 = inlined_call_operand.hbm [shape: bf16[16,32], index: 0, kind: input, shape index: {}]   ;;  %s422_s1 = inlined_call_operand.hbm [shape: bf16[32,96], index: 1, kind: input, shape index: {}]   ;;  %s423_s2 = inlined_call_operand.vmem [shape: f32[1,96], index: 2, kind: input, shape index: {}]   ;;  %s424_s3 = inlined_call_operand.hbm [shape: bf16[16,32], index: 3, kind: output, shape index: {0}]   ;;  %s425_s4 = inlined_call_operand.hbm [shape: bf16[16,32], index: 4, kind: output, shape index: {1}]   ;;  %s426_s5 = inlined_call_operand.hbm [shape: bf16[16,32], index: 5, kind: output, shape index: {2}]  }
   0x1   :  { %12 = vsyncpa [#allocation6], 0 }
   0x2   :  { %13 = vsyncpa [#allocation4], 0 }
   0x3   :  { %14 = vsyncpa [#allocation9], 0  ;;  %s340_s18 = smov [#allocation2]  }
   0x4   :  { %s20_s19 = sshll.u32 %s340_s18, 4  ;;  %s21_s19 = int_to_ptr.vmem [resolvable:$true] %s20_s19 }
   0x5   :  { %s240_s20 = scalar_lea.vmem %s21_s19, 128  ;;  %p245_p1 = scmp.lt.s32.totalorder %s21_s19, %s21_s19 }
   0x6   :  { %p241_p0 = scmp.ne.s32.totalorder %s21_s19, %s240_s20  ;;  %p246_p2 = scmp.lt.s32.totalorder %s240_s20, %s240_s20 }
   0x8   :  { %p247_p3 = por %p246_p2, %p245_p1 }
   0xa   :  { %p248_p4 = pnand %p247_p3, %p241_p0 }
   0xc   :  { %251 = shalt.err (!%p248_p4)
}
   0xd   :  { %s341_s21 = smov 64   ;;  %s342_s22 = smov 4  }
   0xe   :  { %26 = dma.hbm_to_vmem [thread:$0]  %s421_s0, 128, %s21_s19, [#allocation3], %s341_s21, %s341_s21, %s342_s22  }
   0xf   :  { %s343_s25 = smov [#allocation5]  }
  0x10   :  { %s32_s26 = sshll.u32 %s343_s25, 4  ;;  %s33_s26 = int_to_ptr.vmem [resolvable:$true] %s32_s26 }
  0x11   :  { %s260_s27 = scalar_lea.vmem %s33_s26, 256  ;;  %p265_p6 = scmp.lt.s32.totalorder %s33_s26, %s33_s26 }
  0x12   :  { %p261_p5 = scmp.ne.s32.totalorder %s33_s26, %s260_s27  ;;  %p266_p7 = scmp.lt.s32.totalorder %s260_s27, %s260_s27 }
  0x14   :  { %p267_p8 = por %p266_p7, %p265_p6 }
  0x16   :  { %p268_p9 = pnand %p267_p8, %p261_p5 }
  0x18   :  { %271 = shalt.err (!%p268_p9)
}
  0x19   :  { %38 = dma.hbm_to_vmem [thread:$0]  %s422_s1, 256, %s33_s26, [#allocation6], %s341_s21, %s341_s21, %s342_s22  }
  0x1a   :  { %332 = dma.done.wait [#allocation3], 128  }
  0x1b   :  { %333 = vsyncadd [#allocation3], 4294967168 }
  0x1c   :  { %334 = dma.done.wait [#allocation6], 256  }
  0x1d   :  { %335 = vsyncadd [#allocation6], 4294967040  ;;  %v344_v0 = vmov 0.0   ;;  %vm345_vm0 = vmmov 0   ;;  %v229_v1 = vld [vmem:[#allocation5 + $0x8] sm:$0xff]   ;;  %v230_v2 = vld [vmem:[#allocation5] sm:$0xff]  }
  0x1e   :  { %211 = vmatprep.subr.bf16.mxu0 %v344_v0  ;;  %215 = vmatprep.mubr.msk.bf16.mxu0 %vm345_vm0, %v344_v0  ;;  %v231_v3 = vld [vmem:[#allocation2] sm:$0xff]   ;;  %vm78_vm1 = vcmask 261120   ;;  %vm131_vm2 = vcmask 257024   ;;  %s346_s1 = smov [#allocation7]   ;;  %s347_s7 = smov 96  }
  0x1f   :  { %212 = vmatpush3.bf16.msra.mxu0 %v229_v1  ;;  %v199_v4 = vld [vmem:[%s423_s2] ss:$0 sm:$0xff]  ;;  %s155_s6 = sshll.u32 %s346_s1, 4  ;;  %s156_s6 = int_to_ptr.vmem [resolvable:$true] %s155_s6 }
  0x20   :  { %213 = vmatprep.subr.bf16.mxu0 %v344_v0  ;;  %s272_s2 = scalar_lea.vmem %s156_s6, 128  ;;  %p277_p11 = scmp.lt.s32.totalorder %s156_s6, %s156_s6 }
  0x21   :  { %p273_p10 = scmp.ne.s32.totalorder %s156_s6, %s272_s2  ;;  %p278_p12 = scmp.lt.s32.totalorder %s272_s2, %s272_s2 }
  0x23   :  { %214 = vmatpush3.bf16.msra.mxu0 %v230_v2  ;;  %p279_p13 = por %p278_p12, %p277_p11 }
  0x25   :  { %p280_p0 = pnand %p279_p13, %p273_p10 }
  0x26   :  { %216 = vmatmul.mubr.msk.bf16.vlgmr.msra.gmra.mxu0 %vm78_vm1, %v231_v3 }
  0xe6   :  { %v116_v5 = vpop.f32.mrf.mxu0 }
  0xe7   :  { %v117_v6 = vadd.f32 %v199_v4, %v116_v5 }
  0xe8   :  { %v217_v7 = vpop.f32.mrf.mxu0 }
  0xe9   :  { %v206_v8 = vpack.c.bf16 %v117_v6, %v117_v6 }
  0xea   :  { %v119_v9 = vpop.f32.mrf.mxu0 }
  0xeb   :  { %v120_v10 = vadd.f32 %v199_v4, %v119_v9  ;;  %142 = vrot.lane.b32.xlu1 %v206_v8, %s341_s21  ;;  %134 = vrot.lane.b32.xlu0 %v206_v8, %s347_s7  ;;  %132 = vst.msk [vmem:[#allocation7] sm:$0xf] %vm131_vm2, %v206_v8 }
  0xec   :  { %v218_v11 = vpop.f32.mrf.mxu0 }
  0xed   :  { %v207_v12 = vpack.c.bf16 %v120_v10, %v120_v10 }
  0xef   :  { %144 = vrot.lane.b32.xlu1 %v207_v12, %s341_s21  ;;  %136 = vrot.lane.b32.xlu0 %v207_v12, %s347_s7  ;;  %133 = vst.msk [vmem:[#allocation7 + $0x4] sm:$0xf] %vm131_vm2, %v207_v12 }
  0xf0   :  { %283 = shalt.err (!%p280_p0)
}
  0xf1   :  { %161 = dma.vmem_to_hbm [thread:$0]  %s156_s6, 128, %s424_s3, [#allocation4], %s341_s21, %s341_s21, %s342_s22  }
  0xf2   :  { %s348_s10 = smov [#allocation8]   ;;  %s349_s12 = smov [#allocation10]  }
  0xf3   :  { %s167_s11 = sshll.u32 %s348_s10, 4  ;;  %s179_s13 = sshll.u32 %s349_s12, 4  ;;  %s168_s11 = int_to_ptr.vmem [resolvable:$true] %s167_s11  ;;  %s180_s13 = int_to_ptr.vmem [resolvable:$true] %s179_s13 }
  0xf4   :  { %s292_s14 = scalar_lea.vmem %s168_s11, 128  ;;  %p297_p2 = scmp.lt.s32.totalorder %s168_s11, %s168_s11 }
  0xf5   :  { %p293_p1 = scmp.ne.s32.totalorder %s168_s11, %s292_s14  ;;  %p298_p3 = scmp.lt.s32.totalorder %s292_s14, %s292_s14 }
  0xf7   :  { %p299_p4 = por %p298_p3, %p297_p2 }
  0xf9   :  { %p300_p5 = pnand %p299_p4, %p293_p1 }
 0x15d   :  { %v143_v13 = vpop.permute.xlu1 %142  ;;  %v135_v14 = vpop.permute.xlu0 %134 }
 0x15e   :  { %148 = vst.msk [vmem:[#allocation10] sm:$0xf] %vm131_vm2, %v143_v13  ;;  %140 = vst.msk [vmem:[#allocation8] sm:$0xf] %vm131_vm2, %v135_v14 }
 0x161   :  { %v145_v15 = vpop.permute.xlu1 %144  ;;  %v137_v16 = vpop.permute.xlu0 %136 }
 0x162   :  { %149 = vst.msk [vmem:[#allocation10 + $0x4] sm:$0xf] %vm131_vm2, %v145_v15  ;;  %141 = vst.msk [vmem:[#allocation8 + $0x4] sm:$0xf] %vm131_vm2, %v137_v16 }
 0x163   :  { %303 = shalt.err (!%p300_p5)
}
 0x164   :  { %173 = dma.vmem_to_hbm [thread:$0]  %s168_s11, 128, %s425_s4, [#allocation9], %s341_s21, %s341_s21, %s342_s22  }
 0x165   :  { %s312_s16 = scalar_lea.vmem %s180_s13, 128  ;;  %p317_p7 = scmp.lt.s32.totalorder %s180_s13, %s180_s13 }
 0x166   :  { %p313_p6 = scmp.ne.s32.totalorder %s180_s13, %s312_s16  ;;  %p318_p8 = scmp.lt.s32.totalorder %s312_s16, %s312_s16 }
 0x168   :  { %p319_p9 = por %p318_p8, %p317_p7 }
 0x16a   :  { %p320_p10 = pnand %p319_p9, %p313_p6 }
 0x16c   :  { %323 = shalt.err (!%p320_p10)
}
 0x16d   :  { %185 = dma.vmem_to_hbm [thread:$0]  %s180_s13, 128, %s426_s5, [#allocation9], %s341_s21, %s341_s21, %s342_s22  }
 0x16e   :  { %336 = dma.done.wait [#allocation4], 128  }
 0x16f   :  { %337 = vsyncadd [#allocation4], 4294967168 }
 0x170   :  { %338 = dma.done.wait [#allocation9], 256  }
 0x171   :  { %339 = vsyncadd [#allocation9], 4294967040 }
 0x172   :  { %195 = vsyncpa [#allocation3], 1 }
 0x173   :  { %196 = vsyncpa [#allocation6], 1 }
 0x174   :  { %197 = vsyncpa [#allocation4], 1 }
 0x175   :  { %198 = vsyncpa [#allocation9], 1 }

</bundles_post_ra>
